<compile_context>
chip_gen: v7x
topology: tpu7x:2x2x1
jax: 0.10.0
libtpu: 0.0.40
codegen_flags: <defaults>
</compile_context>

<pallas_src>
import functools

import jax
import jax.numpy as jnp
import numpy as np
from jax import lax
from jax.experimental import pallas as pl
from jax.experimental.pallas import tpu as pltpu

EPS = 1e-5
INV_SQRT2 = 0.7071067811865476


def _gelu_erf(y):
    # Exact-erf GELU, matching nn.GELU(approximate='none').
    return 0.5 * y * (1.0 + lax.erf(y * INV_SQRT2))


def _vmem_limit(est_bytes):
    # Tiling bounds per-step blocks; clamp to a budget that is safe on all gens
    # (v7x physical VMEM is 64 MiB, so never raise past ~56 MiB).
    return int(min(max(est_bytes, 32 << 20), 56 << 20))


# --------------------------- fused path (small images) ----------------------
def _fused_kernel(x_ref, w_ref, o_ref, *, R, Wo_pad, inv_count):
    # x_ref: (Hs*Wo_pad, KC2) bf16 slab; rows index (row-pair p, out col j).
    # w_ref: (2, KC2, Co_pad) bf16, one matrix per H shift a.
    # o_ref: (R, Co_pad) bf16, R = Ho*Wo_pad (lane-dense unmasked stores).
    # 16-aligned shifted windows -> two MXU matmuls, f32 accumulation.
    acc = (jnp.dot(x_ref[pl.ds(0, R), :], w_ref[0],
                   preferred_element_type=jnp.float32)
           + jnp.dot(x_ref[pl.ds(Wo_pad, R), :], w_ref[1],
                     preferred_element_type=jnp.float32))

    # InstanceNorm2d (biased var, eps=1e-5, no affine). Padded rows/cols and
    # padded channels are exactly zero in acc, so full-tile sums equal sums
    # over the Ho*Wo valid spatial positions.
    ysum = jnp.sum(acc, axis=0, keepdims=True)
    ysq = jnp.sum(acc * acc, axis=0, keepdims=True)
    mean = ysum * inv_count
    var = jnp.maximum(ysq * inv_count - mean * mean, 0.0)
    yn = (acc - mean) * lax.rsqrt(var + EPS)
    o_ref[...] = _gelu_erf(yn).astype(o_ref.dtype)


# ------------------------ tiled two-pass path (large images) ----------------
def _conv_stats_kernel(x_ref, w_ref, conv_ref, stats_ref, *, Rt, Wo_pad):
    # Per spatial tile: conv (staged as bf16) + per-tile sum / sum-of-squares.
    acc = (jnp.dot(x_ref[pl.ds(0, Rt), :], w_ref[0],
                   preferred_element_type=jnp.float32)
           + jnp.dot(x_ref[pl.ds(Wo_pad, Rt), :], w_ref[1],
                     preferred_element_type=jnp.float32))
    conv_ref[...] = acc.astype(conv_ref.dtype)
    stats_ref[0:1, :] = jnp.sum(acc, axis=0, keepdims=True)
    stats_ref[1:2, :] = jnp.sum(acc * acc, axis=0, keepdims=True)


def _norm_gelu_kernel(conv_ref, scale_ref, bias_ref, o_ref):
    # Fused normalize + exact-erf GELU epilogue (single expression, no extra
    # full-size temporaries).
    y = conv_ref[...].astype(jnp.float32)
    o_ref[...] = _gelu_erf(y * scale_ref[...] + bias_ref[...]).astype(o_ref.dtype)


def unet_block_forward(x, weight, *, tile_ho=None, channels_last=False):
    """x: (N, Cin, H, W) float32 (NCHW); weight: (Cout, Cin, 4, 4).

    tile_ho: output rows per spatial tile (None -> auto, whole image if it fits).
    channels_last: return (N, Ho, Wo, Cout) and skip the final NCHW transpose.
    """
    N, Cin, H, W = x.shape
    Cout = weight.shape[0]
    K, S, Pd = 4, 2, 1
    Ho = (H + 2 * Pd - K) // S + 1
    Wo = (W + 2 * Pd - K) // S + 1
    Hs = Ho + 1                              # row-pairs covering padded input
    Wo_pad = ((Wo + 15) // 16) * 16          # bf16 sublane tile; keep 16-aligned
    Co_pad = ((Cout + 127) // 128) * 128     # lane-dense output width
    KC2 = 2 * K * Cin                        # (r, kw, c) channels per slab row
    count = Ho * Wo

    # ---- compact layout transform, bf16 BEFORE the transform (no 4x im2col) --
    xt = jnp.transpose(x.astype(jnp.bfloat16), (0, 2, 3, 1))      # NHWC bf16
    xp = jnp.pad(xt, ((0, 0), (Pd, Pd), (Pd, Pd), (0, 0)))
    parts = []
    for r in range(2):
        for kw in range(K):
            # u[n, p, j, (r, kw, c)] = x_pad[n, 2p + r, 2j + kw, c]
            parts.append(xp[:, r:r + 2 * Hs:2, kw:kw + 2 * Wo:2, :])
    u = jnp.stack(parts, axis=3).reshape(N, Hs, Wo, KC2)
    u = jnp.pad(u, ((0, 0), (0, 0), (0, Wo_pad - Wo), (0, 0)))     # zero cols

    # ---- weight -> w2[a, (r, kw, c), o], Cout zero-padded to Co_pad ----------
    w2 = weight.reshape(Cout, Cin, 2, 2, K)                        # (o,c,a,r,kw)
    w2 = jnp.transpose(w2, (2, 3, 4, 1, 0)).reshape(2, KC2, Cout)
    w2 = jnp.pad(w2, ((0, 0), (0, 0), (0, Co_pad - Cout))).astype(jnp.bfloat16)
    w_bytes = int(w2.size) * 2

    # ---- spatial tile size (output rows per grid step) -----------------------
    if tile_ho is None:
        slab_budget = 4 << 20   # bf16 LHS slab tile
        acc_budget = 8 << 20    # f32 accumulator tile
        th = min(Ho,
                 max(1, slab_budget // (Wo_pad * KC2 * 2) - 1),
                 max(1, acc_budget // (Wo_pad * Co_pad * 4)))
    else:
        th = max(1, min(int(tile_ho), Ho))

    if th >= Ho:
        # ------------------ fused single-pass path (fits per image) ----------
        R = Ho * Wo_pad
        u1 = u.reshape(N, Hs * Wo_pad, KC2)
        kernel = functools.partial(_fused_kernel, R=R, Wo_pad=Wo_pad,
                                   inv_count=1.0 / float(count))
        est = (2 * Hs * Wo_pad * KC2 * 2 + w_bytes
               + 2 * R * Co_pad * 2 + 3 * R * Co_pad * 4)
        out = pl.pallas_call(
            kernel,
            out_shape=jax.ShapeDtypeStruct((N, R, Co_pad), jnp.bfloat16),
            grid_spec=pltpu.PrefetchScalarGridSpec(
                num_scalar_prefetch=0,
                grid=(N,),
                in_specs=[
                    pl.BlockSpec((pl.Squeezed(), Hs * Wo_pad, KC2),
                                 lambda n: (n, 0, 0)),
                    # grid-invariant weight: single buffer, stays resident
                    pl.BlockSpec((2, KC2, Co_pad), lambda n: (0, 0, 0),
                                 pipeline_mode=pl.Buffered(1)),
                ],
                out_specs=pl.BlockSpec((pl.Squeezed(), R, Co_pad),
                                       lambda n: (n, 0, 0)),
            ),
            compiler_params=pltpu.CompilerParams(
                dimension_semantics=("parallel",),
                vmem_limit_bytes=_vmem_limit(est)),
            cost_estimate=pl.CostEstimate(
                flops=4 * N * R * KC2 * Co_pad,
                transcendentals=N * R * Co_pad,
                bytes_accessed=int(u1.size) * 2 + w_bytes + N * R * Co_pad * 2),
        )(u1, w2)
        out = out.reshape(N, Ho, Wo_pad, Co_pad)
        rows_h = Ho
    else:
        # ------------------ tiled two-pass path (bounded VMEM) ---------------
        n_tiles = -(-Ho // th)               # ceil
        Rt = th * Wo_pad                     # output rows per tile
        Hp = n_tiles * th + 1                # row-pairs needed incl. overlap
        u_p = jnp.pad(u, ((0, 0), (0, Hp - Hs), (0, 0), (0, 0)))
        # Each tile carries its own (th+1) row-pairs (one duplicated boundary
        # row-pair) so BlockSpec tiles are non-overlapping and self-contained.
        body = u_p[:, :n_tiles * th].reshape(N, n_tiles, th, Wo_pad, KC2)
        extra = u_p[:, th:n_tiles * th + 1:th][:, :, None]
        u_t = jnp.concatenate([body, extra], axis=2)
        u_t = u_t.reshape(N, n_tiles, (th + 1) * Wo_pad, KC2)

        # -- pass 1: conv + per-tile partial stats (both grid axes parallel) --
        conv_kernel = functools.partial(_conv_stats_kernel, Rt=Rt, Wo_pad=Wo_pad)
        est1 = (2 * (th + 1) * Wo_pad * KC2 * 2 + w_bytes
                + 2 * Rt * Co_pad * 2 + 3 * Rt * Co_pad * 4)
        conv_out, stats = pl.pallas_call(
            conv_kernel,
            out_shape=(
                jax.ShapeDtypeStruct((N, n_tiles * Rt, Co_pad), jnp.bfloat16),
                jax.ShapeDtypeStruct((N, n_tiles, 2, Co_pad), jnp.float32),
            ),
            grid_spec=pltpu.PrefetchScalarGridSpec(
                num_scalar_prefetch=0,
                grid=(N, n_tiles),
                in_specs=[
                    pl.BlockSpec((pl.Squeezed(), pl.Squeezed(),
                                  (th + 1) * Wo_pad, KC2),
                                 lambda n, t: (n, t, 0, 0)),
                    pl.BlockSpec((2, KC2, Co_pad), lambda n, t: (0, 0, 0),
                                 pipeline_mode=pl.Buffered(1)),
                ],
                out_specs=(
                    pl.BlockSpec((pl.Squeezed(), Rt, Co_pad),
                                 lambda n, t: (n, t, 0)),
                    pl.BlockSpec((pl.Squeezed(), pl.Squeezed(), 2, Co_pad),
                                 lambda n, t: (n, t, 0, 0)),
                ),
            ),
            compiler_params=pltpu.CompilerParams(
                dimension_semantics=("parallel", "parallel"),
                vmem_limit_bytes=_vmem_limit(est1)),
            cost_estimate=pl.CostEstimate(
                flops=4 * N * n_tiles * Rt * KC2 * Co_pad,
                transcendentals=0,
                bytes_accessed=int(u_t.size) * 2 + w_bytes
                               + N * n_tiles * Rt * Co_pad * 2),
        )(u_t, w2)

        # -- tiny stats finalize in plain JAX (N x Cout scalars) ---------------
        # Note: single-pass E[x^2]-mean^2 is cancellation-prone at extreme
        # magnitudes; acceptable here (stats accumulated in f32 from the f32
        # accumulator before the bf16 stage).
        s = jnp.sum(stats, axis=1)                       # (N, 2, Co_pad)
        mean = s[:, 0] / count
        var = jnp.maximum(s[:, 1] / count - mean * mean, 0.0)
        scale = lax.rsqrt(var + EPS)                     # (N, Co_pad)
        bias = (-mean * scale).reshape(N, 1, Co_pad)
        scale = scale.reshape(N, 1, Co_pad)

        # -- pass 2: normalize + GELU over the staged bf16 conv output --------
        est2 = 4 * Rt * Co_pad * 2 + 2 * Rt * Co_pad * 4 + 4 * Co_pad * 4
        out = pl.pallas_call(
            _norm_gelu_kernel,
            out_shape=jax.ShapeDtypeStruct((N, n_tiles * Rt, Co_pad),
                                           jnp.bfloat16),
            grid_spec=pltpu.PrefetchScalarGridSpec(
                num_scalar_prefetch=0,
                grid=(N, n_tiles),
                in_specs=[
                    pl.BlockSpec((pl.Squeezed(), Rt, Co_pad),
                                 lambda n, t: (n, t, 0)),
                    pl.BlockSpec((pl.Squeezed(), 1, Co_pad),
                                 lambda n, t: (n, 0, 0)),
                    pl.BlockSpec((pl.Squeezed(), 1, Co_pad),
                                 lambda n, t: (n, 0, 0)),
                ],
                out_specs=pl.BlockSpec((pl.Squeezed(), Rt, Co_pad),
                                       lambda n, t: (n, t, 0)),
            ),
            compiler_params=pltpu.CompilerParams(
                dimension_semantics=("parallel", "parallel"),
                vmem_limit_bytes=_vmem_limit(est2)),
            cost_estimate=pl.CostEstimate(
                flops=6 * N * n_tiles * Rt * Co_pad,
                transcendentals=N * n_tiles * Rt * Co_pad,
                bytes_accessed=2 * N * n_tiles * Rt * Co_pad * 2),
        )(conv_out, scale, bias)
        out = out.reshape(N, n_tiles * th, Wo_pad, Co_pad)
        rows_h = n_tiles * th

    # Strip spatial/channel padding -> (N, Ho, Wo, Cout) bf16.
    del rows_h
    out = out[:, :Ho, :Wo, :Cout]
    if channels_last:
        return out
    # Kept only for PyTorch NCHW semantics; consumers chaining UNet blocks
    # should pass channels_last=True and skip this extra HBM pass.
    return jnp.transpose(out, (0, 3, 1, 2))


def _reference(x, weight):
    """Plain-JAX f32 reference mirroring the PyTorch module (for validation)."""
    y = lax.conv_general_dilated(
        x, weight, window_strides=(2, 2), padding=((1, 1), (1, 1)),
        dimension_numbers=("NCHW", "OIHW", "NCHW"))
    mean = jnp.mean(y, axis=(2, 3), keepdims=True)
    var = jnp.mean((y - mean) ** 2, axis=(2, 3), keepdims=True)
    yn = (y - mean) * lax.rsqrt(var + EPS)
    return 0.5 * yn * (1.0 + lax.erf(yn * INV_SQRT2))


if __name__ == "__main__":
    key = jax.random.PRNGKey(0)
    kx, kwt = jax.random.split(key)
    N, Cin, H, W = 2, 4, 16, 16
    Cout = 8
    x = jax.random.normal(kx, (N, Cin, H, W), dtype=jnp.float32)
    # Deterministic synthetic init (shape matches nn.Conv2d(Cin, Cout, 4, 2, 1, bias=False)).
    fan_in = Cin * 4 * 4
    weight = jax.random.normal(kwt, (Cout, Cin, 4, 4),
                               dtype=jnp.float32) / jnp.sqrt(fan_in)

    y_ref = np.asarray(_reference(x, weight))

    # Fused single-pass path (whole image per grid step).
    y_fused = unet_block_forward(x, weight)
    jax.block_until_ready(y_fused)
    np.testing.assert_allclose(np.asarray(y_fused.astype(jnp.float32)),
                               y_ref, atol=4e-2, rtol=4e-2)

    # Spatially tiled two-pass path (forced small tile to exercise it).
    y_tiled = unet_block_forward(x, weight, tile_ho=4)
    jax.block_until_ready(y_tiled)
    np.testing.assert_allclose(np.asarray(y_tiled.astype(jnp.float32)),
                               y_ref, atol=4e-2, rtol=4e-2)

    print("KERNEL_OK")
</pallas_src>

<mosaic_0001>
module attributes {stable_mosaic.version = 11 : i64} {
  func.func @_fused_kernel(%arg0: i32, %arg1: memref<1x144x32xbf16, #tpu.memory_space<vmem>>, %arg2: memref<2x32x128xbf16, #tpu.memory_space<vmem>>, %arg3: memref<1x128x128xbf16, #tpu.memory_space<vmem>>) attributes {dimension_semantics = [#tpu.dimension_semantics<parallel>], iteration_bounds = array<i64: 2>, scalar_prefetch = 0 : i64, scratch_operands = 0 : i64, tpu.core_type = #tpu.core_type<tc>, window_params = [{transform_indices = @transform_0, window_bounds = array<i64: 1, 144, 32>}, {pipeline_mode = #tpu.pipeline_mode<synchronous>, transform_indices = @transform_1, window_bounds = array<i64: 2, 32, 128>}, {transform_indices = @transform_2, window_bounds = array<i64: 1, 128, 128>}]} {
    %c0 = arith.constant 0 : index
    %c0_0 = arith.constant 0 : index
    %c0_1 = arith.constant 0 : index
    %0 = vector.load %arg1[%c0, %c0_0, %c0_1] : memref<1x144x32xbf16, #tpu.memory_space<vmem>>, vector<1x128x32xbf16>
    %1 = vector.shape_cast %0 : vector<1x128x32xbf16> to vector<128x32xbf16>
    %c0_2 = arith.constant 0 : index
    %c0_3 = arith.constant 0 : index
    %c0_4 = arith.constant 0 : index
    %2 = vector.load %arg2[%c0_2, %c0_3, %c0_4] : memref<2x32x128xbf16, #tpu.memory_space<vmem>>, vector<1x32x128xbf16>
    %3 = vector.shape_cast %2 : vector<1x32x128xbf16> to vector<32x128xbf16>
    %cst = arith.constant dense<0.000000e+00> : vector<128x128xf32>
    %4 = tpu.matmul %1, %3, %cst {dimension_numbers = #tpu.dot_dimension_numbers<[1], [0], [0], [1], [0, 0, 1, 1], [], []>} : vector<128x32xbf16>, vector<32x128xbf16>, vector<128x128xf32> -> vector<128x128xf32>
    %c0_5 = arith.constant 0 : index
    %c16 = arith.constant 16 : index
    %c0_6 = arith.constant 0 : index
    %5 = vector.load %arg1[%c0_5, %c16, %c0_6] : memref<1x144x32xbf16, #tpu.memory_space<vmem>>, vector<1x128x32xbf16>
    %6 = vector.shape_cast %5 : vector<1x128x32xbf16> to vector<128x32xbf16>
    %c1 = arith.constant 1 : index
    %c0_7 = arith.constant 0 : index
    %c0_8 = arith.constant 0 : index
    %7 = vector.load %arg2[%c1, %c0_7, %c0_8] : memref<2x32x128xbf16, #tpu.memory_space<vmem>>, vector<1x32x128xbf16>
    %8 = vector.shape_cast %7 : vector<1x32x128xbf16> to vector<32x128xbf16>
    %cst_9 = arith.constant dense<0.000000e+00> : vector<128x128xf32>
    %9 = tpu.matmul %6, %8, %cst_9 {dimension_numbers = #tpu.dot_dimension_numbers<[1], [0], [0], [1], [0, 0, 1, 1], [], []>} : vector<128x32xbf16>, vector<32x128xbf16>, vector<128x128xf32> -> vector<128x128xf32>
    %10 = arith.addf %4, %9 : vector<128x128xf32>
    %cst_10 = arith.constant dense<0.000000e+00> : vector<128xf32>
    %11 = vector.multi_reduction <add>, %10, %cst_10 [0] : vector<128x128xf32> to vector<128xf32>
    %12 = vector.shape_cast %11 : vector<128xf32> to vector<1x128xf32>
    %13 = arith.mulf %10, %10 : vector<128x128xf32>
    %cst_11 = arith.constant dense<0.000000e+00> : vector<128xf32>
    %14 = vector.multi_reduction <add>, %13, %cst_11 [0] : vector<128x128xf32> to vector<128xf32>
    %15 = vector.shape_cast %14 : vector<128xf32> to vector<1x128xf32>
    %cst_12 = arith.constant 1.562500e-02 : f32
    %16 = vector.broadcast %cst_12 : f32 to vector<1x128xf32>
    %17 = arith.mulf %12, %16 : vector<1x128xf32>
    %cst_13 = arith.constant 1.562500e-02 : f32
    %18 = vector.broadcast %cst_13 : f32 to vector<1x128xf32>
    %19 = arith.mulf %15, %18 : vector<1x128xf32>
    %20 = arith.mulf %17, %17 : vector<1x128xf32>
    %21 = arith.subf %19, %20 : vector<1x128xf32>
    %cst_14 = arith.constant 0.000000e+00 : f32
    %22 = vector.broadcast %cst_14 : f32 to vector<1x128xf32>
    %23 = arith.maximumf %21, %22 : vector<1x128xf32>
    %24 = vector.broadcast %17 : vector<1x128xf32> to vector<128x128xf32>
    %25 = arith.subf %10, %24 : vector<128x128xf32>
    %cst_15 = arith.constant 9.99999974E-6 : f32
    %26 = vector.broadcast %cst_15 : f32 to vector<1x128xf32>
    %27 = arith.addf %23, %26 : vector<1x128xf32>
    %28 = math.rsqrt %27 : vector<1x128xf32>
    %29 = vector.broadcast %28 : vector<1x128xf32> to vector<128x128xf32>
    %30 = arith.mulf %25, %29 : vector<128x128xf32>
    %cst_16 = arith.constant 5.000000e-01 : f32
    %31 = vector.broadcast %cst_16 : f32 to vector<128x128xf32>
    %32 = arith.mulf %31, %30 : vector<128x128xf32>
    %cst_17 = arith.constant 0.707106769 : f32
    %33 = vector.broadcast %cst_17 : f32 to vector<128x128xf32>
    %34 = arith.mulf %30, %33 : vector<128x128xf32>
    %35 = math.erf %34 : vector<128x128xf32>
    %cst_18 = arith.constant 1.000000e+00 : f32
    %36 = vector.broadcast %cst_18 : f32 to vector<128x128xf32>
    %37 = arith.addf %36, %35 : vector<128x128xf32>
    %38 = arith.mulf %32, %37 : vector<128x128xf32>
    %39 = arith.truncf %38 : vector<128x128xf32> to vector<128x128xbf16>
    %c0_19 = arith.constant 0 : index
    %c0_20 = arith.constant 0 : index
    %c0_21 = arith.constant 0 : index
    %40 = vector.load %arg3[%c0_19, %c0_20, %c0_21] : memref<1x128x128xbf16, #tpu.memory_space<vmem>>, vector<1x128x128xbf16>
    %41 = vector.shape_cast %40 : vector<1x128x128xbf16> to vector<128x128xbf16>
    %42 = vector.shape_cast %39 : vector<128x128xbf16> to vector<1x128x128xbf16>
    tpu.vector_store %arg3[%c0_19, %c0_20, %c0_21], %42 {strides = array<i32>} : memref<1x128x128xbf16, #tpu.memory_space<vmem>>, vector<1x128x128xbf16>,
    return
  }
  func.func @transform_0(%arg0: i32) -> (i32, i32, i32) {
    %c0_i32 = arith.constant 0 : i32
    %c0_i32_0 = arith.constant 0 : i32
    %c0_i32_1 = arith.constant 0 : i32
    return %arg0, %c0_i32, %c0_i32_0 : i32, i32, i32
  }
  func.func @transform_1(%arg0: i32) -> (i32, i32, i32) {
    %c0_i32 = arith.constant 0 : i32
    %c0_i32_0 = arith.constant 0 : i32
    %c0_i32_1 = arith.constant 0 : i32
    %c0_i32_2 = arith.constant 0 : i32
    return %c0_i32, %c0_i32_0, %c0_i32_1 : i32, i32, i32
  }
  func.func @transform_2(%arg0: i32) -> (i32, i32, i32) {
    %c0_i32 = arith.constant 0 : i32
    %c0_i32_0 = arith.constant 0 : i32
    %c0_i32_1 = arith.constant 0 : i32
    return %arg0, %c0_i32, %c0_i32_0 : i32, i32, i32
  }
}

</mosaic_0001>

<bundles_post_ra>
// kernel: tpu_custom_call.1
= control target key start
LH: loop header
LB: loop body
LE: loop exit
PB: predicated region body
PF: predicated region fallthrough
CT: control target
= control target key end

     0   :  { %7 = vsyncpa [#allocation3], 0  ;;  %s1443_s0 = inlined_call_operand.vmem [shape: bf16[2,144,32], index: 0, kind: input, shape index: {}]   ;;  %s1444_s1 = inlined_call_operand.vmem [shape: bf16[2,32,128], index: 1, kind: input, shape index: {}]   ;;  %s1445_s2 = inlined_call_operand.hbm [shape: bf16[2,128,128], index: 2, kind: output, shape index: {}]  }
   0x1   :  { %9 = vsyncpa [#allocation3 + $0x1], 0  ;;  %s1165_s9 = smov 0   ;;  %s1167_s10 = smov 0  }
   0x2   :  { %s1169_s11 = smov 0   ;;  %s1171_s12 = smov 0  }
   0x3 LB: > { %s1186_s13 = sadd.s32 4294967295, %s1145_s12   ;;  %s794_s14 = sadd.s32 4294967294, %s1145_s12   ;;  %s1145_s12 = sphi %s1171_s12, %s1451_s12   ;;  %s1141_s11 = sphi %s1169_s11, %s1450_s11   ;;  %s1137_s10 = sphi %s1167_s10, %s1449_s10   ;;  %s1133_s9 = sphi %s1165_s9, %s1448_s9  }
   0x4   : > { %s1190_s15 = sadd.s32 1, %s1145_s12   ;;  %s69_s16 = sadd.s32 1, %s1141_s11 }
   0x5   : > { %s66_s17 = ssub.s32 %s1145_s12, %s1190_s15  ;;  %p79_p0 = scmp.ne.s32.totalorder %s1141_s11, %s1137_s10 }
   0x6   : > { %p67_p1 = scmp.eq.s32.totalorder %s66_s17, 0  ;;  %p80_p2 = scmp.eq.s32.totalorder %s1186_s13, 1 }
   0x7   : > { %p85_p3 = scmp.ne.s32.totalorder %s1137_s10, %s1133_s9  ;;  %p86_p4 = scmp.eq.s32.totalorder %s794_s14, 1 }
   0x8   : > { %s1201_s18 = scalar_select %p67_p1, %s1141_s11, %s69_s16  }
   0x9   : > { %p1203_p5 = por %p80_p2, %p79_p0  ;;  %p1207_p6 = por %p86_p4, %p85_p3 }
   0xa   : > { %p797_p7 = scmp.ge.s32.totalorder %s1145_s12, 1  ;;  %p115_p8 = scmp.lt.s32.totalorder %s1145_s12, 3 }
   0xc   : > { %p116_p9 = pnand %p797_p7, %p115_p8 }
   0xd   : > { %v1036_v0 = vld [vmem:[%s1444_s1 + $0x10] sm:$0xff] (!%p116_p9)   ;;  %p137_p10 = scmp.lt.s32.totalorder (!%p116_p9), %s1186_s13, 1  ;;  %v1037_v1 = vld [vmem:[%s1444_s1] sm:$0xff] (!%p116_p9)   ;;  %v1038_v2 = vld [vmem:[%s1444_s1 + $0x18] sm:$0xff] (!%p116_p9)   ;;  %vm222_vm0 = vcmask (!%p116_p9), 261120   ;;  %s134_s6 = sand.u32 (!%p116_p9), 1, %s1137_s10  }
   0xe   : > { %119 = sbr.rel (%p116_p9) target bundleno = 359 (0x167), region = 28  ;;  %938 = vmatprep.subr.bf16.mxu1 (!%p116_p9), %v1036_v0  ;;  %958 = vmatprep.subr.bf16.mxu0 (!%p116_p9), %v1037_v1  ;;  %v1039_v3 = vld [vmem:[%s1444_s1 + $0x8] sm:$0xff] (!%p116_p9)   ;;  %s798_s7 = sshll.u32 (!%p116_p9), %s134_s6, 6 }
   0xf   : > { %939 = vmatpush3.bf16.msra.mxu1 (!%p116_p9), %v1036_v0  ;;  %959 = vmatpush3.bf16.msra.mxu0 (!%p116_p9), %v1037_v1  ;;  %s1369_s8 = scalar_lea.vmem (!%p116_p9), [#allocation2], %s798_s7  ;;  %s870_s14 = sshll.u32 (!%p116_p9), %s1186_s13, 10 }
  0x10   : > { %940 = vmatprep.subr.bf16.mxu1 (!%p116_p9), %v1038_v2  ;;  %960 = vmatprep.subr.bf16.mxu0 (!%p116_p9), %v1039_v3  ;;  %s732_s16 = sshll.u32 (!%p116_p9), %s1369_s8, 4  ;;  %s1394_s22 = scalar_lea.hbm (!%p116_p9), %s1445_s2, %s870_s14  ;;  %s1396_s16 = int_to_ptr.vmem [resolvable:$true] %s732_s16 }
  0x11   : > { %s1083_s23 = scalar_lea.vmem (!%p116_p9), %s1396_s16, 1024  ;;  %s1147_s24 = smov (!%p116_p9), [#allocation2]  }
  0x12   : > { %p1084_p11 = scmp.ne.s32.totalorder (!%p116_p9), %s1396_s16, %s1083_s23  ;;  %s1087_s25 = sshll.u32 (!%p116_p9), %s1147_s24, 4  ;;  %s1088_s25 = int_to_ptr.vmem [resolvable:$false] %s1087_s25 }
  0x13   : > { %941 = vmatpush3.bf16.msra.mxu1 (!%p116_p9), %v1038_v2  ;;  %961 = vmatpush3.bf16.msra.mxu0 (!%p116_p9), %v1039_v3  ;;  %s1089_s26 = scalar_lea.vmem (!%p116_p9), %s1088_s25, 2048  ;;  %p1090_p0 = scmp.lt.s32.totalorder (!%p116_p9), %s1396_s16, %s1088_s25 }
  0x14   : > { %p1085_p12 = pnand (!%p116_p9), %p1084_p11, %p1203_p5  ;;  %p1091_p1 = scmp.lt.s32.totalorder (!%p116_p9), %s1089_s26, %s1083_s23 }
  0x15   : > { %s138_s27 = scalar_select %p137_p10, %s1186_s13, 1 }
  0x16   : > { %s1402_s13 = scalar_lea.sflag [#allocation3], %s134_s6  ;;  %p1086_p13 = pneg %p1085_p12 }
  0x17   : > { %s994_s30 = smul.u32 72, %s138_s27  ;;  %p1092_p2 = por %p1091_p1, %p1090_p0 }
  0x19   : > { %s141_s5 = scalar_lea.vmem %s1443_s0, %s994_s30  ;;  %p1093_p3 = pnand %p1092_p2, %p1086_p13 }
  0x1a   : > { %v1040_v4 = vld [vmem:[%s141_s5 + $0x8] sm:$0xff]   ;;  %v1041_v5 = vld [vmem:[%s141_s5] sm:$0xff]   ;;  %v1042_v6 = vld [vmem:[%s141_s5 + $0x10] sm:$0xff]  }
  0x1b   : > { %942 = vmatprep.mubr.msk.bf16.mxu1 %vm222_vm0, %v1040_v4  ;;  %962 = vmatprep.mubr.msk.bf16.mxu0 %vm222_vm0, %v1041_v5  ;;  %v1043_v7 = vld [vmem:[%s141_s5 + $0x18] sm:$0xff]   ;;  %v1044_v8 = vld [vmem:[%s141_s5 + $0x20] sm:$0xff]   ;;  %v1045_v9 = vld [vmem:[%s141_s5 + $0x28] sm:$0xff]  }
  0x1c   : > { %943 = vmatmul.mubr.msk.bf16.vlgmr.msra.gmra.mrb[0].mxu1 %vm222_vm0, %v1042_v6  ;;  %963 = vmatmul.mubr.msk.bf16.vlgmr.msra.gmra.mrb[0].mxu0 %vm222_vm0, %v1040_v4  ;;  %v1046_v10 = vld [vmem:[%s141_s5 + $0x30] sm:$0xff]   ;;  %v1047_v11 = vld [vmem:[%s141_s5 + $0x38] sm:$0xff]   ;;  %v1048_v12 = vld [vmem:[%s141_s5 + $0x40] sm:$0xff]  }
  0x1d   : > { %946 = vmatprep.mubr.msk.bf16.mxu1 %vm222_vm0, %v1043_v7  ;;  %966 = vmatprep.mubr.msk.bf16.mxu0 %vm222_vm0, %v1042_v6 }
  0x24   : > { %947 = vmatmul.mubr.msk.bf16.gmra.mrb[4].mxu1 %vm222_vm0, %v1044_v8  ;;  %967 = vmatmul.mubr.msk.bf16.gmra.mrb[4].mxu0 %vm222_vm0, %v1043_v7 }
  0x25   : > { %950 = vmatprep.mubr.msk.bf16.mxu1 %vm222_vm0, %v1045_v9  ;;  %970 = vmatprep.mubr.msk.bf16.mxu0 %vm222_vm0, %v1044_v8 }
  0x2c   : > { %951 = vmatmul.mubr.msk.bf16.gmra.mrb[8].mxu1 %vm222_vm0, %v1046_v10  ;;  %971 = vmatmul.mubr.msk.bf16.gmra.mrb[8].mxu0 %vm222_vm0, %v1045_v9 }
  0x2d   : > { %954 = vmatprep.mubr.msk.bf16.mxu1 %vm222_vm0, %v1047_v11  ;;  %974 = vmatprep.mubr.msk.bf16.mxu0 %vm222_vm0, %v1046_v10 }
  0x34   : > { %955 = vmatmul.mubr.msk.bf16.gmra.mrb[12].mxu1 %vm222_vm0, %v1048_v12  ;;  %975 = vmatmul.mubr.msk.bf16.gmra.mrb[12].mxu0 %vm222_vm0, %v1047_v11 }
  0xef   : > { %v944_v13 = vpop.f32.mrb[0].mxu1  ;;  %v964_v14 = vpop.f32.mrb[0].mxu0 }
  0xf0   : > { %v1246_v15 = vadd.f32 %v964_v14, %v944_v13  ;;  %v281_v16 = vpop.f32.mrb[1].mxu1  ;;  %v398_v17 = vpop.f32.mrb[1].mxu0 }
  0xf1   : > { %v1248_v18 = vadd.f32 %v398_v17, %v281_v16  ;;  %v945_v19 = vpop.f32.mrb[2].mxu1  ;;  %v965_v20 = vpop.f32.mrb[2].mxu0 }
  0xf2   : > { %v1250_v21 = vadd.f32 %v965_v20, %v945_v19  ;;  %v284_v22 = vpop.f32.mrb[3].mxu1  ;;  %v401_v23 = vpop.f32.mrb[3].mxu0  ;;  %v484_v28 = vmul.f32 %v1246_v15, %v1246_v15 }
  0xf3   : > { %v1252_v24 = vadd.f32 %v401_v23, %v284_v22  ;;  %v482_v25 = vmul.f32 %v1248_v18, %v1248_v18 }
  0xf4   : > { %v485_v36 = vmul.f32 %v1250_v21, %v1250_v21 }
  0xf5   : > { %v461_v26 = vadd.f32 %v1252_v24, %v1248_v18  ;;  %v483_v27 = vmul.f32 %v1252_v24, %v1252_v24 }
  0xf7   : > { %v462_v29 = vadd.f32 %v461_v26, %v1246_v15  ;;  %v498_v30 = vadd.f32 %v483_v27, %v482_v25  ;;  %v948_v31 = vpop.f32.mrb[4].mxu1  ;;  %v968_v32 = vpop.f32.mrb[4].mxu0 }
  0xf8   : > { %v1263_v33 = vadd.f32 %v968_v32, %v948_v31  ;;  %v297_v34 = vpop.f32.mrb[5].mxu1  ;;  %v414_v35 = vpop.f32.mrb[5].mxu0 }
  0xf9   : > { %v499_v37 = vadd.f32 %v498_v30, %v484_v28  ;;  %v1267_v38 = vadd.f32 %v414_v35, %v297_v34  ;;  %v463_v39 = vadd.f32 %v462_v29, %v1250_v21  ;;  %v949_v40 = vpop.f32.mrb[6].mxu1  ;;  %v969_v41 = vpop.f32.mrb[6].mxu0 }
  0xfa   : > { %v1270_v42 = vadd.f32 %v969_v41, %v949_v40  ;;  %v300_v43 = vpop.f32.mrb[7].mxu1  ;;  %v417_v44 = vpop.f32.mrb[7].mxu0  ;;  %v488_v52 = vmul.f32 %v1263_v33, %v1263_v33 }
  0xfb   : > { %v464_v45 = vadd.f32 %v463_v39, %v1267_v38  ;;  %v486_v46 = vmul.f32 %v1267_v38, %v1267_v38  ;;  %v500_v47 = vadd.f32 %v499_v37, %v485_v36  ;;  %v1275_v48 = vadd.f32 %v417_v44, %v300_v43 }
  0xfc   : > { %v489_v60 = vmul.f32 %v1270_v42, %v1270_v42 }
  0xfd   : > { %v501_v49 = vadd.f32 %v500_v47, %v486_v46  ;;  %v465_v50 = vadd.f32 %v464_v45, %v1275_v48  ;;  %v487_v51 = vmul.f32 %v1275_v48, %v1275_v48 }
  0xff   : > { %v466_v53 = vadd.f32 %v465_v50, %v1263_v33  ;;  %v502_v54 = vadd.f32 %v501_v49, %v487_v51  ;;  %v952_v55 = vpop.f32.mrb[8].mxu1  ;;  %v972_v56 = vpop.f32.mrb[8].mxu0 }
 0x100   : > { %v1283_v57 = vadd.f32 %v972_v56, %v952_v55  ;;  %v313_v58 = vpop.f32.mrb[9].mxu1  ;;  %v430_v59 = vpop.f32.mrb[9].mxu0 }
 0x101   : > { %v503_v61 = vadd.f32 %v502_v54, %v488_v52  ;;  %v1287_v62 = vadd.f32 %v430_v59, %v313_v58  ;;  %v467_v63 = vadd.f32 %v466_v53, %v1270_v42  ;;  %v953_v0 = vpop.f32.mrb[10].mxu1  ;;  %v973_v1 = vpop.f32.mrb[10].mxu0 }
 0x102   : > { %v1290_v2 = vadd.f32 %v973_v1, %v953_v0  ;;  %v316_v3 = vpop.f32.mrb[11].mxu1  ;;  %v433_v4 = vpop.f32.mrb[11].mxu0  ;;  %v492_v12 = vmul.f32 %v1283_v57, %v1283_v57 }
 0x103   : > { %v468_v5 = vadd.f32 %v467_v63, %v1287_v62  ;;  %v490_v6 = vmul.f32 %v1287_v62, %v1287_v62  ;;  %v504_v7 = vadd.f32 %v503_v61, %v489_v60  ;;  %v1295_v8 = vadd.f32 %v433_v4, %v316_v3 }
 0x104   : > { %v493_v23 = vmul.f32 %v1290_v2, %v1290_v2 }
 0x105   : > { %v505_v9 = vadd.f32 %v504_v7, %v490_v6  ;;  %v469_v10 = vadd.f32 %v468_v5, %v1295_v8  ;;  %v491_v11 = vmul.f32 %v1295_v8, %v1295_v8 }
 0x107   : > { %v470_v13 = vadd.f32 %v469_v10, %v1283_v57  ;;  %v506_v14 = vadd.f32 %v505_v9, %v491_v11  ;;  %v956_v16 = vpop.f32.mrb[12].mxu1  ;;  %v976_v17 = vpop.f32.mrb[12].mxu0 }
 0x108   : > { %v1303_v19 = vadd.f32 %v976_v17, %v956_v16  ;;  %v329_v20 = vpop.f32.mrb[13].mxu1  ;;  %v446_v22 = vpop.f32.mrb[13].mxu0 }
 0x109   : > { %v507_v25 = vadd.f32 %v506_v14, %v492_v12  ;;  %v447_v26 = vadd.f32 %v446_v22, %v329_v20  ;;  %v471_v27 = vadd.f32 %v470_v13, %v1290_v2  ;;  %v957_v28 = vpop.f32.mrb[14].mxu1  ;;  %v977_v29 = vpop.f32.mrb[14].mxu0 }
 0x10a   : > { %v1308_v30 = vadd.f32 %v977_v29, %v957_v28  ;;  %v332_v31 = vpop.f32.mrb[15].mxu1  ;;  %v449_v32 = vpop.f32.mrb[15].mxu0  ;;  %v496_v43 = vmul.f32 %v1303_v19, %v1303_v19 }
 0x10b   : > { %v472_v34 = vadd.f32 %v471_v27, %v447_v26  ;;  %v494_v35 = vmul.f32 %v447_v26, %v447_v26  ;;  %v508_v36 = vadd.f32 %v507_v25, %v493_v23  ;;  %v450_v37 = vadd.f32 %v449_v32, %v332_v31 }
 0x10c   : > { %v497_v46 = vmul.f32 %v1308_v30, %v1308_v30 }
 0x10d   : > { %v509_v39 = vadd.f32 %v508_v36, %v494_v35  ;;  %v473_v40 = vadd.f32 %v472_v34, %v450_v37  ;;  %v495_v41 = vmul.f32 %v450_v37, %v450_v37 }
 0x10f   : > { %v474_v44 = vadd.f32 %v473_v40, %v1303_v19  ;;  %v510_v45 = vadd.f32 %v509_v39, %v495_v41 }
 0x111   : > { %v475_v47 = vadd.f32 %v474_v44, %v1308_v30  ;;  %v511_v49 = vadd.f32 %v510_v45, %v496_v43 }
 0x113   : > { %v476_v50 = vrot.slane %v475_v47, 4  ;;  %v512_v51 = vadd.f32 %v511_v49, %v497_v46 }
 0x115   : > { %v477_v52 = vadd.f32 %v476_v50, %v475_v47  ;;  %v513_v53 = vrot.slane %v512_v51, 4 }
 0x117   : > { %v478_v54 = vrot.slane %v477_v52, 2  ;;  %v514_v55 = vadd.f32 %v513_v53, %v512_v51 }
 0x119   : > { %v479_v56 = vadd.f32 %v478_v54, %v477_v52  ;;  %v515_v58 = vrot.slane %v514_v55, 2 }
 0x11b   : > { %v480_v59 = vrot.slane %v479_v56, 1  ;;  %v516_v60 = vadd.f32 %v515_v58, %v514_v55 }
 0x11d   : > { %v481_v61 = vadd.f32 %v480_v59, %v479_v56  ;;  %v517_v63 = vrot.slane %v516_v60, 1 }
 0x11f   : > { %v518_v0 = vadd.f32 %v517_v63, %v516_v60  ;;  %v519_v1 = vmul.f32 0.015625, %v481_v61 }
 0x121   : > { %v520_v3 = vmul.f32 0.015625, %v518_v0  ;;  %v521_v4 = vmul.f32 %v519_v1, %v519_v1  ;;  %v536_v5 = vsub.f32 %v447_v26, %v519_v1  ;;  %v537_v6 = vsub.f32 %v450_v37, %v519_v1 }
 0x122   : > { %v524_v7 = vsub.f32 %v1248_v18, %v519_v1  ;;  %v525_v9 = vsub.f32 %v1252_v24, %v519_v1  ;;  %v526_v10 = vsub.f32 %v1246_v15, %v519_v1  ;;  %v527_v11 = vsub.f32 %v1250_v21, %v519_v1 }
 0x123   : > { %v522_v12 = vsub.f32 %v520_v3, %v521_v4  ;;  %v528_v13 = vsub.f32 %v1267_v38, %v519_v1  ;;  %v529_v14 = vsub.f32 %v1275_v48, %v519_v1  ;;  %v530_v16 = vsub.f32 %v1263_v33, %v519_v1 }
 0x124   : > { %v531_v17 = vsub.f32 %v1270_v42, %v519_v1  ;;  %v532_v20 = vsub.f32 %v1287_v62, %v519_v1  ;;  %v533_v22 = vsub.f32 %v1295_v8, %v519_v1  ;;  %v534_v18 = vsub.f32 %v1283_v57, %v519_v1 }
 0x125   : > { %v523_v24 = vmax.f32 %v522_v12, 0.0  ;;  %v535_v15 = vsub.f32 %v1290_v2, %v519_v1  ;;  %v538_v21 = vsub.f32 %v1303_v19, %v519_v1  ;;  %v539_v23 = vsub.f32 %v1308_v30, %v519_v1 }
 0x127   : > { %v540_v38 = vadd.f32 1e-05, %v523_v24 }
 0x129   : > { %1049 = vrsqrt.f32 %v540_v38 }
 0x133   : > { %v1050_v48 = vpop.eup %1049 }
 0x134   : > { %v554_v25 = vmul.f32 %v1050_v48, %v536_v5  ;;  %v555_v33 = vmul.f32 %v1050_v48, %v537_v6  ;;  %v542_v26 = vmul.f32 %v1050_v48, %v524_v7  ;;  %v543_v42 = vmul.f32 %v1050_v48, %v525_v9 }
 0x135   : > { %v1330_v27 = vmul.f32 %v1050_v48, %v526_v10  ;;  %v1332_v62 = vmul.f32 %v1050_v48, %v527_v11  ;;  %v1334_v8 = vmul.f32 %v1050_v48, %v528_v13  ;;  %v1336_v57 = vmul.f32 %v1050_v48, %v529_v14 }
 0x136   : > { %v586_v2 = vmul.f32 0.70710677, %v554_v25  ;;  %v587_v28 = vmul.f32 0.70710677, %v555_v33  ;;  %v1338_v19 = vmul.f32 %v1050_v48, %v530_v16  ;;  %v1340_v29 = vmul.f32 %v1050_v48, %v531_v17 }
 0x137   : > { %v1342_v30 = vmul.f32 %v1050_v48, %v532_v20  ;;  %v1344_v31 = vmul.f32 %v1050_v48, %v533_v22  ;;  %v1346_v32 = vmul.f32 %v1050_v48, %v534_v18  ;;  %v1348_v34 = vmul.f32 %v1050_v48, %v535_v15 }
 0x138   : > { %1051 = verf.f32 %v586_v2  ;;  %v1350_v35 = vmul.f32 %v1050_v48, %v538_v21  ;;  %v1352_v36 = vmul.f32 %v1050_v48, %v539_v23  ;;  %v574_v37 = vmul.f32 0.70710677, %v542_v26 }
 0x139   : > { %1053 = verf.f32 %v587_v28  ;;  %v575_v39 = vmul.f32 0.70710677, %v543_v42  ;;  %v576_v40 = vmul.f32 0.70710677, %v1330_v27  ;;  %v577_v41 = vmul.f32 0.70710677, %v1332_v62 }
 0x13a   : > { %v578_v43 = vmul.f32 0.70710677, %v1334_v8  ;;  %1055 = verf.f32 %v574_v37  ;;  %v579_v44 = vmul.f32 0.70710677, %v1336_v57  ;;  %v580_v45 = vmul.f32 0.70710677, %v1338_v19 }
 0x13b   : > { %1057 = verf.f32 %v575_v39  ;;  %v581_v47 = vmul.f32 0.70710677, %v1340_v29  ;;  %v570_v50 = vmul.f32 0.5, %v554_v25  ;;  %v582_v52 = vmul.f32 0.70710677, %v1342_v30 }
 0x13c   : > { %1059 = verf.f32 %v576_v40  ;;  %v571_v53 = vmul.f32 0.5, %v555_v33  ;;  %v583_v55 = vmul.f32 0.70710677, %v1344_v31  ;;  %v584_v58 = vmul.f32 0.70710677, %v1346_v32 }
 0x13d   : > { %1061 = verf.f32 %v577_v41  ;;  %v585_v60 = vmul.f32 0.70710677, %v1348_v34  ;;  %v588_v61 = vmul.f32 0.70710677, %v1350_v35  ;;  %v589_v0 = vmul.f32 0.70710677, %v1352_v36 }
 0x13e   : > { %1063 = verf.f32 %v578_v43  ;;  %v558_v4 = vmul.f32 0.5, %v542_v26  ;;  %v559_v7 = vmul.f32 0.5, %v543_v42  ;;  %v560_v11 = vmul.f32 0.5, %v1330_v27 }
 0x13f   : > { %1065 = verf.f32 %v579_v44  ;;  %v561_v16 = vmul.f32 0.5, %v1332_v62  ;;  %v562_v18 = vmul.f32 0.5, %v1334_v8  ;;  %v563_v23 = vmul.f32 0.5, %v1336_v57 }
 0x140   : > { %1067 = verf.f32 %v580_v45  ;;  %v564_v26 = vmul.f32 0.5, %v1338_v19  ;;  %v565_v2 = vmul.f32 0.5, %v1340_v29  ;;  %v566_v40 = vmul.f32 0.5, %v1342_v30 }
 0x141   : > { %1069 = verf.f32 %v581_v47  ;;  %v567_v44 = vmul.f32 0.5, %v1344_v31  ;;  %v568_v29 = vmul.f32 0.5, %v1346_v32  ;;  %v569_v30 = vmul.f32 0.5, %v1348_v34 }
 0x142   : > { %v1052_v46 = vpop.eup %1051  ;;  %1071 = verf.f32 %v582_v52  ;;  %v573_v32 = vmul.f32 0.5, %v1352_v36 }
 0x143   : > { %v1054_v49 = vpop.eup %1053  ;;  %v618_v51 = vadd.f32 1.0, %v1052_v46  ;;  %1073 = verf.f32 %v583_v55  ;;  %v572_v55 = vmul.f32 0.5, %v1350_v35 }
 0x144   : > { %v619_v54 = vadd.f32 1.0, %v1054_v49  ;;  %v1056_v1 = vpop.eup %1055  ;;  %1075 = verf.f32 %v584_v58 }
 0x145   : > { %v634_v56 = vmul.f32 %v618_v51, %v570_v50  ;;  %v1058_v3 = vpop.eup %1057  ;;  %1077 = verf.f32 %v585_v60  ;;  %v606_v5 = vadd.f32 1.0, %v1056_v1 }
 0x146   : > { %v635_v59 = vmul.f32 %v619_v54, %v571_v53  ;;  %v1060_v6 = vpop.eup %1059  ;;  %1079 = verf.f32 %v588_v61  ;;  %v607_v9 = vadd.f32 1.0, %v1058_v3 }
 0x147   : > { %v1062_v10 = vpop.eup %1061  ;;  %1081 = verf.f32 %v589_v0  ;;  %v608_v12 = vadd.f32 1.0, %v1060_v6  ;;  %v622_v13 = vmul.f32 %v606_v5, %v558_v4 }
 0x148   : > { %v904_v63 = vpack.c.bf16 %v635_v59, %v634_v56  ;;  %v1064_v14 = vpop.eup %1063  ;;  %v609_v17 = vadd.f32 1.0, %v1062_v10  ;;  %v623_v20 = vmul.f32 %v607_v9, %v559_v7 }
 0x149   : > { %v1066_v22 = vpop.eup %1065  ;;  %v610_v24 = vadd.f32 1.0, %v1064_v14  ;;  %v624_v15 = vmul.f32 %v608_v12, %v560_v11 }
 0x14a   : > { %916 = vst [vmem:[%s1369_s8 + $0x30] sm:$0xff] %v904_v63   ;;  %v1068_v21 = vpop.eup %1067  ;;  %v611_v38 = vadd.f32 1.0, %v1066_v22  ;;  %v625_v48 = vmul.f32 %v609_v17, %v561_v16  ;;  %v874_v25 = vpack.c.bf16 %v623_v20, %v622_v13 }
 0x14b   : > { %v1070_v33 = vpop.eup %1069  ;;  %v612_v42 = vadd.f32 1.0, %v1068_v21  ;;  %v626_v27 = vmul.f32 %v610_v24, %v562_v18 }
 0x14c   : > { %v1072_v62 = vpop.eup %1071  ;;  %v613_v28 = vadd.f32 1.0, %v1070_v33  ;;  %v627_v8 = vmul.f32 %v611_v38, %v563_v23  ;;  %875 = vst [vmem:[%s1369_s8] sm:$0xff] %v874_v25   ;;  %v879_v37 = vpack.c.bf16 %v625_v48, %v624_v15 }
 0x14d   : > { %v1074_v39 = vpop.eup %1073  ;;  %v614_v57 = vadd.f32 1.0, %v1072_v62  ;;  %v628_v41 = vmul.f32 %v612_v42, %v564_v26 }
 0x14e   : > { %v1076_v43 = vpop.eup %1075  ;;  %v615_v19 = vadd.f32 1.0, %v1074_v39  ;;  %v629_v45 = vmul.f32 %v613_v28, %v565_v2  ;;  %911 = vst [vmem:[%s1369_s8 + $0x8] sm:$0xff] %v879_v37   ;;  %v884_v46 = vpack.c.bf16 %v627_v8, %v626_v27 }
 0x14f   : > { %v1078_v47 = vpop.eup %1077  ;;  %v616_v49 = vadd.f32 1.0, %v1076_v43  ;;  %v630_v50 = vmul.f32 %v614_v57, %v566_v40 }
 0x150   : > { %v1080_v51 = vpop.eup %1079  ;;  %v617_v52 = vadd.f32 1.0, %v1078_v47  ;;  %v631_v53 = vmul.f32 %v615_v19, %v567_v44  ;;  %912 = vst [vmem:[%s1369_s8 + $0x10] sm:$0xff] %v884_v46   ;;  %v889_v31 = vpack.c.bf16 %v629_v45, %v628_v41 }
 0x151   : > { %v1082_v54 = vpop.eup %1081  ;;  %v620_v56 = vadd.f32 1.0, %v1080_v51  ;;  %v632_v58 = vmul.f32 %v616_v49, %v568_v29 }
 0x152   : > { %v621_v59 = vadd.f32 1.0, %v1082_v54  ;;  %v633_v60 = vmul.f32 %v617_v52, %v569_v30  ;;  %913 = vst [vmem:[%s1369_s8 + $0x18] sm:$0xff] %v889_v31   ;;  %v894_v34 = vpack.c.bf16 %v631_v53, %v630_v50 }
 0x153   : > { %v636_v61 = vmul.f32 %v620_v56, %v572_v55 }
 0x154   : > { %v637_v63 = vmul.f32 %v621_v59, %v573_v32  ;;  %914 = vst [vmem:[%s1369_s8 + $0x20] sm:$0xff] %v894_v34   ;;  %v899_v0 = vpack.c.bf16 %v633_v60, %v632_v58 }
 0x156   : > { %915 = vst [vmem:[%s1369_s8 + $0x28] sm:$0xff] %v899_v0   ;;  %v909_v35 = vpack.c.bf16 %v637_v63, %v636_v61 }
 0x158   : > { %917 = vst [vmem:[%s1369_s8 + $0x38] sm:$0xff] %v909_v35  }
 0x159   : > { %1096 = shalt.err (!%p1093_p3)
}
 0x15a   : > { %s1097_s27 = scalar_lea.hbm %s1394_s22, 1024  ;;  %s1101_s30 = scalar_lea.hbm %s1445_s2, 2048 }
 0x15b   : > { %p1098_p4 = scmp.ne.s32.totalorder %s1394_s22, %s1097_s27  ;;  %p1102_p9 = scmp.lt.u32.totalorder %s1394_s22, %s1445_s2 }
 0x15c   : > { %p1103_p10 = scmp.lt.u32.totalorder %s1101_s30, %s1097_s27  ;;  %p1105_p12 = scmp.lt.u32.totalorder %s1097_s27, %s1394_s22 }
 0x15d   : > { %p1099_p7 = pnand %p1098_p4, %p1203_p5 }
 0x15e   : > { %p1104_p11 = por %p1103_p10, %p1102_p9 }
 0x15f   : > { %p1100_p8 = pneg %p1099_p7 }
 0x160   : > { %p1106_p13 = por %p1105_p12, %p1104_p11 }
 0x162   : > { %p1107_p0 = pnand %p1106_p13, %p1100_p8 }
 0x164   : > { %1110 = shalt.err (!%p1107_p0)
}
 0x165   : > { %s1148_s5 = smov 64   ;;  %s1149_s6 = smov 4  }
 0x166   : > { %995 = dma.vmem_to_hbm [thread:$0]  (%p1203_p5), %s1396_s16, 1024, %s1394_s22, %s1402_s13, %s1148_s5, %s1148_s5, %s1149_s6  }
 0x167 PF: > { %p1001_p1 = scmp.ge.s32.totalorder %s1145_s12, 2  ;;  %s747_s7 = sand.u32 1, %s1133_s9  }
 0x168   : > { %s748_s8 = scalar_lea.sflag [#allocation3], %s747_s7 }
 0x169   : > { %p998_p2 = pnand %p1001_p1, %p1207_p6 }
 0x16b   : > { %1128 = dma.done.wait (!%p998_p2), %s748_s8, 1024  }
 0x16c   : > { %1130 = vsyncadd (!%p998_p2), %s748_s8, 4294966272  ;;  %p12_p3 = scmp.ge.s32.totalorder %s1190_s15, 4   ;;  %s1448_s9 = smov %s1137_s10 }
 0x16d   : > { %s1449_s10 = smov %s1141_s11  ;;  %s1450_s11 = smov %s1201_s18 }
 0x16e   : > { %s1451_s12 = smov %s1190_s15  ;;  %14 = sbr.rel (!%p12_p3) target bundleno = 3 (0x3), region = 64 }
 0x175   :  { %753 = vsyncpa [#allocation3], 1 }
 0x176   :  { %755 = vsyncpa [#allocation3 + $0x1], 1 }

</bundles_post_ra>
